<compile_context>
chip_gen: v5e
topology: v5e:2x2
jax: 0.10.0
libtpu: 0.0.40
codegen_flags: <defaults>
</compile_context>

<pallas_src>
import jax
import jax.numpy as jnp
from jax import lax
from jax.experimental import pallas as pl
from jax.experimental.pallas import tpu as pltpu

BN_EPS = 1e-5


def _tatt1_kernel(x_ref, wh_ref, wf_ref, vbig_ref, b_ref, gamma_ref, beta_ref,
                  mask_ref, out_ref):
    f32 = jnp.float32
    x = x_ref[...]                               # (B*T, N*C)  lane-dense input
    BT = x.shape[0]
    T = out_ref.shape[1]
    C = wf_ref.shape[1]
    B = BT // T

    # ---- fused channel collapses + folded parameter chain (two MXU matmuls) ----
    # hcat[:, 0:C]  == f1 @ (w @ wd0)   (tap k=0, pairs with t2-1)
    # hcat[:, C:2C] == f1 @ (w @ wd1)   (tap k=1, pairs with t2+1)
    hcat = jnp.dot(x, wh_ref[...], preferred_element_type=f32)   # (BT, 2C)
    f2a = jnp.dot(x, wf_ref[...], preferred_element_type=f32)    # (BT, C)

    # ---- dilated conv_d2 temporal shift: row shifts + batch-boundary masks ----
    zrow = jnp.zeros((1, C), f32)
    shifted_prev = jnp.concatenate([zrow, f2a[:-1, :]], axis=0)  # f2a[b, t-1, :]
    shifted_next = jnp.concatenate([f2a[1:, :], zrow], axis=0)   # f2a[b, t+1, :]
    r = lax.broadcasted_iota(jnp.int32, (BT, 1), 0)
    t_idx = r % T
    f2a_prev = jnp.where(t_idx == 0, 0.0, shifted_prev)
    f2a_next = jnp.where(t_idx == T - 1, 0.0, shifted_next)
    f2cat = jnp.concatenate([f2a_prev, f2a_next], axis=1)        # (BT, 2C)

    # ---- s[b*T+t1, t2] = sum_j hcat[b*T+t1, j] * f2cat[b*T+t2, j] ----
    # per-batch (T, 2C) . (T, 2C)^T block dots (B is tiny and static)
    dn = (((1,), (1,)), ((), ()))
    s_blocks = [
        lax.dot_general(hcat[b * T:(b + 1) * T, :],
                        f2cat[b * T:(b + 1) * T, :],
                        dn, preferred_element_type=f32)
        for b in range(B)
    ]
    s = jnp.concatenate(s_blocks, axis=0)                        # (BT, T)

    # ---- sigmoid(s + b)  (exp on EUP, exact reciprocal) ----
    logits = pl.reciprocal(1.0 + jnp.exp(-(s + b_ref[...])))     # (BT, T)

    # ---- v @ logits as one un-batched block-diagonal matmul ----
    logits2 = jnp.dot(vbig_ref[...], logits,
                      preferred_element_type=f32)                # (BT, T)

    # ---- BatchNorm1d (training mode): per-t2 stats over (batch, t1) rows ----
    inv_cnt = 1.0 / jnp.float32(BT)
    mean = jnp.sum(logits2, axis=0, keepdims=True) * inv_cnt     # (1, T)
    xc = logits2 - mean
    var = jnp.sum(xc * xc, axis=0, keepdims=True) * inv_cnt      # (1, T)
    y = xc * lax.rsqrt(var + BN_EPS) * gamma_ref[...] + beta_ref[...]

    # ---- masked row softmax over the last axis ----
    z = y + mask_ref[...]
    m = jnp.max(z, axis=-1, keepdims=True)
    e = jnp.exp(z - m)
    out_ref[...] = (e * pl.reciprocal(jnp.sum(e, axis=-1, keepdims=True))
                    ).astype(out_ref.dtype)


def fold_tatt1_params(params, batch):
    """Host-side folding of all parameter-only contractions."""
    w1 = params['conv1_w'].reshape(-1).astype(jnp.float32)   # (C,)
    w2 = params['conv2_w'].reshape(-1).astype(jnp.float32)   # (N,)
    wd = params['convd2_w'].astype(jnp.float32)              # (C, C, 2)
    w = params['w'].astype(jnp.float32)                      # (N, C)
    C = w1.shape[0]
    N = w2.shape[0]
    T = params['b'].shape[0]

    # W_k = w @ wd[:, :, k]  -> fold conv1 weight in as well:
    # Wh[(n, c'), j] = w1[c'] * (w @ wd_k)[n, j]
    W0 = w @ wd[:, :, 0]                                      # (N, C)
    W1 = w @ wd[:, :, 1]                                      # (N, C)
    Wh = jnp.concatenate([
        (w1[None, :, None] * W0[:, None, :]).reshape(N * C, C),
        (w1[None, :, None] * W1[:, None, :]).reshape(N * C, C),
    ], axis=1)                                                # (N*C, 2C)

    # conv2 collapse as a matmul: Wf[(n, c'), c] = w2[n] * (c' == c)
    Wf = (w2[:, None, None] *
          jnp.eye(C, dtype=jnp.float32)[None, :, :]).reshape(N * C, C)

    # block-diagonal v so the batched matmul becomes one dense matmul
    Vbig = jnp.kron(jnp.eye(batch, dtype=jnp.float32),
                    params['v'].astype(jnp.float32))          # (B*T, B*T)

    return dict(
        Wh=Wh,
        Wf=Wf,
        Vbig=Vbig,
        b=jnp.tile(params['b'].astype(jnp.float32), (batch, 1)),       # (B*T, T)
        mask=jnp.tile(params['mask'].astype(jnp.float32), (batch, 1)),  # (B*T, T)
        gamma=params['bn_gamma'].reshape(1, T).astype(jnp.float32),
        beta=params['bn_beta'].reshape(1, T).astype(jnp.float32),
    )


def tatt1_forward(seq, folded):
    """seq: (B, c_in, num_nodes, tem_size) float32 — PyTorch NCHW convention."""
    B, C, N, T = seq.shape
    BT = B * T
    NC = N * C
    # lane-dense layout: rows = b*T + t (48), cols = n*C + c (64)
    x = jnp.transpose(seq, (0, 3, 2, 1)).reshape(BT, NC).astype(jnp.float32)

    vmem = pl.BlockSpec(memory_space=pltpu.MemorySpace.VMEM)
    flops = (2 * BT * NC * (3 * C)        # X @ Wh  and  X @ Wf
             + 2 * B * T * (2 * C) * T    # per-batch s blocks
             + 2 * BT * BT * T            # Vbig @ logits
             + 16 * BT * T)               # elementwise epilogue
    bytes_accessed = 4 * (BT * NC + NC * 3 * C + BT * BT + 3 * BT * T
                          + 2 * T + BT * T)
    cost = pl.CostEstimate(flops=int(flops),
                           transcendentals=int(2 * BT * T + T),
                           bytes_accessed=int(bytes_accessed))

    out2d = pl.pallas_call(
        _tatt1_kernel,
        out_shape=jax.ShapeDtypeStruct((BT, T), jnp.float32),
        in_specs=[vmem] * 8,
        out_specs=vmem,
        compiler_params=pltpu.CompilerParams(vmem_limit_bytes=4 * 1024 * 1024),
        cost_estimate=cost,
    )(x, folded['Wh'], folded['Wf'], folded['Vbig'], folded['b'],
      folded['gamma'], folded['beta'], folded['mask'])
    return out2d.reshape(B, T, T)


def tatt1_reference(seq, params):
    """Pure-JAX reference following the PyTorch forward literally."""
    B, C, N, T = seq.shape
    w1 = params['conv1_w'].reshape(C)
    w2 = params['conv2_w'].reshape(N)
    wd = params['convd2_w']
    w = params['w']
    bparam = params['b']
    v = params['v']
    gamma = params['bn_gamma']
    beta = params['bn_beta']
    mask = params['mask']

    f1 = jnp.einsum('bcnt,c->btn', seq, w1)                   # conv1 + squeeze
    f2a = jnp.einsum('bcnt,n->bct', seq, w2)                  # conv2 + squeeze
    pad = jnp.pad(f2a, ((0, 0), (0, 0), (1, 1)))              # conv_d2 (k=2, d=2, p=1)
    f2 = (jnp.einsum('oc,bct->bot', wd[:, :, 0], pad[:, :, 0:T])
          + jnp.einsum('oc,bct->bot', wd[:, :, 1], pad[:, :, 2:T + 2]))
    g1 = jnp.einsum('btn,nc->btc', f1, w)
    s = jnp.einsum('btc,bcu->btu', g1, f2) + bparam
    logits = 1.0 / (1.0 + jnp.exp(-s))
    logits2 = jnp.einsum('tk,bku->btu', v, logits)
    mean = jnp.mean(logits2, axis=(0, 1))
    var = jnp.mean((logits2 - mean) ** 2, axis=(0, 1))
    y = (logits2 - mean) / jnp.sqrt(var + BN_EPS) * gamma + beta
    z = y + mask
    m = jnp.max(z, axis=-1, keepdims=True)
    e = jnp.exp(z - m)
    return e / jnp.sum(e, axis=-1, keepdims=True)


if __name__ == "__main__":
    # tem_size must be 24 to match the hard-coded 24x24 mask in the module.
    B, C, N, T = 2, 4, 16, 24      # batch, c_in, num_nodes, tem_size
    key = jax.random.PRNGKey(0)
    ks = jax.random.split(key, 6)

    seq = jax.random.normal(ks[0], (B, C, N, T), jnp.float32)

    A = jnp.zeros((T, T), jnp.float32).at[:12, :12].set(1.0).at[12:, 12:].set(1.0)
    params = {
        'conv1_w': jax.random.normal(ks[1], (1, C, 1, 1), jnp.float32) * 0.5,
        'conv2_w': jax.random.normal(ks[2], (1, N, 1, 1), jnp.float32) * 0.25,
        'convd2_w': jax.random.normal(ks[3], (C, C, 2), jnp.float32) * 0.3,
        'w': jax.random.normal(ks[4], (N, C), jnp.float32) / jnp.sqrt(float(N)),
        'b': jnp.zeros((T, T), jnp.float32),
        'v': jax.random.normal(ks[5], (T, T), jnp.float32) / jnp.sqrt(float(T)),
        'bn_gamma': jnp.ones((T,), jnp.float32),
        'bn_beta': jnp.zeros((T,), jnp.float32),
        'mask': (-1e14) * (1.0 - A),
    }

    # parameter-only folding happens once, outside the per-call path
    folded = jax.tree_util.tree_map(jax.block_until_ready,
                                    fold_tatt1_params(params, B))

    out = jax.jit(tatt1_forward)(seq, folded)
    out = jax.block_until_ready(out)

    ref = tatt1_reference(seq, params)
    assert out.shape == (B, T, T), out.shape
    assert bool(jnp.allclose(out, ref, atol=2e-3, rtol=0.0)), "mismatch vs reference"
    assert bool(jnp.allclose(jnp.sum(out, axis=-1), 1.0, atol=1e-4)), "rows not normalized"

    print("KERNEL_OK")
</pallas_src>

<mosaic_0001>
module attributes {stable_mosaic.version = 11 : i64} {
  func.func @_tatt1_kernel(%arg0: memref<48x64xf32, #tpu.memory_space<vmem>>, %arg1: memref<64x8xf32, #tpu.memory_space<vmem>>, %arg2: memref<64x4xf32, #tpu.memory_space<vmem>>, %arg3: memref<48x48xf32, #tpu.memory_space<vmem>>, %arg4: memref<48x24xf32, #tpu.memory_space<vmem>>, %arg5: memref<1x24xf32, #tpu.memory_space<vmem>>, %arg6: memref<1x24xf32, #tpu.memory_space<vmem>>, %arg7: memref<48x24xf32, #tpu.memory_space<vmem>>, %arg8: memref<48x24xf32, #tpu.memory_space<vmem>>) attributes {dimension_semantics = [], scalar_prefetch = 0 : i64, scratch_operands = 0 : i64, tpu.core_type = #tpu.core_type<tc>} {
    %c0 = arith.constant 0 : index
    %c0_0 = arith.constant 0 : index
    %0 = vector.load %arg0[%c0, %c0_0] : memref<48x64xf32, #tpu.memory_space<vmem>>, vector<48x64xf32>
    %c0_1 = arith.constant 0 : index
    %c0_2 = arith.constant 0 : index
    %1 = vector.load %arg1[%c0_1, %c0_2] : memref<64x8xf32, #tpu.memory_space<vmem>>, vector<64x8xf32>
    %cst = arith.constant dense<0.000000e+00> : vector<48x8xf32>
    %2 = tpu.matmul %0, %1, %cst {dimension_numbers = #tpu.dot_dimension_numbers<[1], [0], [0], [1], [0, 0, 1, 1], [], []>} : vector<48x64xf32>, vector<64x8xf32>, vector<48x8xf32> -> vector<48x8xf32>
    %c0_3 = arith.constant 0 : index
    %c0_4 = arith.constant 0 : index
    %3 = vector.load %arg2[%c0_3, %c0_4] : memref<64x4xf32, #tpu.memory_space<vmem>>, vector<64x4xf32>
    %cst_5 = arith.constant dense<0.000000e+00> : vector<48x4xf32>
    %4 = tpu.matmul %0, %3, %cst_5 {dimension_numbers = #tpu.dot_dimension_numbers<[1], [0], [0], [1], [0, 0, 1, 1], [], []>} : vector<48x64xf32>, vector<64x4xf32>, vector<48x4xf32> -> vector<48x4xf32>
    %cst_6 = arith.constant 0.000000e+00 : f32
    %5 = vector.broadcast %cst_6 : f32 to vector<1x4xf32>
    %6 = vector.extract_strided_slice %4 {offsets = [0, 0], sizes = [47, 4], strides = [1, 1]} : vector<48x4xf32> to vector<47x4xf32>
    %7 = tpu.concatenate %5, %6 in 0 : vector<1x4xf32>, vector<47x4xf32> -> vector<48x4xf32>
    %8 = vector.extract_strided_slice %4 {offsets = [1, 0], sizes = [47, 4], strides = [1, 1]} : vector<48x4xf32> to vector<47x4xf32>
    %9 = tpu.concatenate %8, %5 in 0 : vector<47x4xf32>, vector<1x4xf32> -> vector<48x4xf32>
    %10 = tpu.iota {dimensions = array<i32: 0>} : vector<48x1xi32>
    %c24_i32 = arith.constant 24 : i32
    %c0_i32 = arith.constant 0 : i32
    %11 = arith.cmpi eq, %c24_i32, %c0_i32 : i32
    %c1_i32 = arith.constant 1 : i32
    %12 = arith.select %11, %c1_i32, %c24_i32 : i32
    %13 = vector.broadcast %12 : i32 to vector<48x1xi32>
    %14 = arith.remsi %10, %13 : vector<48x1xi32>
    %c0_i32_7 = arith.constant 0 : i32
    %15 = vector.broadcast %c0_i32_7 : i32 to vector<48x1xi32>
    %16 = arith.cmpi ne, %14, %15 : vector<48x1xi32>
    %c0_i32_8 = arith.constant 0 : i32
    %17 = vector.broadcast %c0_i32_8 : i32 to vector<48x1xi32>
    %18 = arith.cmpi slt, %14, %17 : vector<48x1xi32>
    %c0_i32_9 = arith.constant 0 : i32
    %19 = arith.cmpi slt, %12, %c0_i32_9 : i32
    %20 = vector.broadcast %19 : i1 to vector<48x1xi1>
    %21 = vector.broadcast %20 : vector<48x1xi1> to vector<48x1xi1>
    %22 = arith.xori %18, %21 : vector<48x1xi1>
    %23 = arith.andi %22, %16 : vector<48x1xi1>
    %24 = vector.broadcast %12 : i32 to vector<48x1xi32>
    %25 = arith.addi %14, %24 : vector<48x1xi32>
    %26 = arith.select %23, %25, %14 : vector<48x1xi1>, vector<48x1xi32>
    %c0_i32_10 = arith.constant 0 : i32
    %27 = vector.broadcast %c0_i32_10 : i32 to vector<48x1xi32>
    %28 = arith.cmpi eq, %26, %27 : vector<48x1xi32>
    %cst_11 = arith.constant 0.000000e+00 : f32
    %29 = vector.shape_cast %28 : vector<48x1xi1> to vector<48x1xi1>
    %30 = vector.broadcast %29 : vector<48x1xi1> to vector<48x4xi1>
    %31 = vector.broadcast %cst_11 : f32 to vector<48x4xf32>
    %32 = arith.select %30, %31, %7 : vector<48x4xi1>, vector<48x4xf32>
    %c23_i32 = arith.constant 23 : i32
    %33 = vector.broadcast %c23_i32 : i32 to vector<48x1xi32>
    %34 = arith.cmpi eq, %26, %33 : vector<48x1xi32>
    %cst_12 = arith.constant 0.000000e+00 : f32
    %35 = vector.shape_cast %34 : vector<48x1xi1> to vector<48x1xi1>
    %36 = vector.broadcast %35 : vector<48x1xi1> to vector<48x4xi1>
    %37 = vector.broadcast %cst_12 : f32 to vector<48x4xf32>
    %38 = arith.select %36, %37, %9 : vector<48x4xi1>, vector<48x4xf32>
    %39 = tpu.concatenate %32, %38 in 1 : vector<48x4xf32>, vector<48x4xf32> -> vector<48x8xf32>
    %40 = vector.extract_strided_slice %2 {offsets = [0, 0], sizes = [24, 8], strides = [1, 1]} : vector<48x8xf32> to vector<24x8xf32>
    %41 = vector.extract_strided_slice %39 {offsets = [0, 0], sizes = [24, 8], strides = [1, 1]} : vector<48x8xf32> to vector<24x8xf32>
    %cst_13 = arith.constant dense<0.000000e+00> : vector<24x24xf32>
    %42 = tpu.matmul %40, %41, %cst_13 {dimension_numbers = #tpu.dot_dimension_numbers<[1], [1], [0], [0], [0, 0, 1, 0], [], []>} : vector<24x8xf32>, vector<24x8xf32>, vector<24x24xf32> -> vector<24x24xf32>
    %43 = vector.extract_strided_slice %2 {offsets = [24, 0], sizes = [24, 8], strides = [1, 1]} : vector<48x8xf32> to vector<24x8xf32>
    %44 = vector.extract_strided_slice %39 {offsets = [24, 0], sizes = [24, 8], strides = [1, 1]} : vector<48x8xf32> to vector<24x8xf32>
    %cst_14 = arith.constant dense<0.000000e+00> : vector<24x24xf32>
    %45 = tpu.matmul %43, %44, %cst_14 {dimension_numbers = #tpu.dot_dimension_numbers<[1], [1], [0], [0], [0, 0, 1, 0], [], []>} : vector<24x8xf32>, vector<24x8xf32>, vector<24x24xf32> -> vector<24x24xf32>
    %46 = tpu.concatenate %42, %45 in 0 : vector<24x24xf32>, vector<24x24xf32> -> vector<48x24xf32>
    %c0_15 = arith.constant 0 : index
    %c0_16 = arith.constant 0 : index
    %47 = vector.load %arg4[%c0_15, %c0_16] : memref<48x24xf32, #tpu.memory_space<vmem>>, vector<48x24xf32>
    %48 = arith.addf %46, %47 : vector<48x24xf32>
    %cst_17 = arith.constant 0.000000e+00 : f32
    %49 = vector.broadcast %cst_17 : f32 to vector<48x24xf32>
    %50 = arith.subf %49, %48 : vector<48x24xf32>
    %51 = math.exp %50 : vector<48x24xf32>
    %cst_18 = arith.constant 1.000000e+00 : f32
    %52 = vector.broadcast %cst_18 : f32 to vector<48x24xf32>
    %53 = arith.addf %52, %51 : vector<48x24xf32>
    %54 = tpu.reciprocal %53 : vector<48x24xf32> -> vector<48x24xf32>
    %c0_19 = arith.constant 0 : index
    %c0_20 = arith.constant 0 : index
    %55 = vector.load %arg3[%c0_19, %c0_20] : memref<48x48xf32, #tpu.memory_space<vmem>>, vector<48x48xf32>
    %cst_21 = arith.constant dense<0.000000e+00> : vector<48x24xf32>
    %56 = tpu.matmul %55, %54, %cst_21 {dimension_numbers = #tpu.dot_dimension_numbers<[1], [0], [0], [1], [0, 0, 1, 1], [], []>} : vector<48x48xf32>, vector<48x24xf32>, vector<48x24xf32> -> vector<48x24xf32>
    %cst_22 = arith.constant 1.000000e+00 : f32
    %cst_23 = arith.constant 4.800000e+01 : f32
    %57 = arith.divf %cst_22, %cst_23 : f32
    %cst_24 = arith.constant dense<0.000000e+00> : vector<24xf32>
    %58 = vector.multi_reduction <add>, %56, %cst_24 [0] : vector<48x24xf32> to vector<24xf32>
    %59 = vector.shape_cast %58 : vector<24xf32> to vector<1x24xf32>
    %60 = vector.broadcast %57 : f32 to vector<1x24xf32>
    %61 = arith.mulf %59, %60 : vector<1x24xf32>
    %62 = vector.broadcast %61 : vector<1x24xf32> to vector<48x24xf32>
    %63 = arith.subf %56, %62 : vector<48x24xf32>
    %64 = arith.mulf %63, %63 : vector<48x24xf32>
    %cst_25 = arith.constant dense<0.000000e+00> : vector<24xf32>
    %65 = vector.multi_reduction <add>, %64, %cst_25 [0] : vector<48x24xf32> to vector<24xf32>
    %66 = vector.shape_cast %65 : vector<24xf32> to vector<1x24xf32>
    %67 = vector.broadcast %57 : f32 to vector<1x24xf32>
    %68 = arith.mulf %66, %67 : vector<1x24xf32>
    %cst_26 = arith.constant 9.99999974E-6 : f32
    %69 = vector.broadcast %cst_26 : f32 to vector<1x24xf32>
    %70 = arith.addf %68, %69 : vector<1x24xf32>
    %71 = math.rsqrt %70 : vector<1x24xf32>
    %72 = vector.broadcast %71 : vector<1x24xf32> to vector<48x24xf32>
    %73 = arith.mulf %63, %72 : vector<48x24xf32>
    %c0_27 = arith.constant 0 : index
    %c0_28 = arith.constant 0 : index
    %74 = vector.load %arg5[%c0_27, %c0_28] : memref<1x24xf32, #tpu.memory_space<vmem>>, vector<1x24xf32>
    %75 = vector.broadcast %74 : vector<1x24xf32> to vector<48x24xf32>
    %76 = arith.mulf %73, %75 : vector<48x24xf32>
    %c0_29 = arith.constant 0 : index
    %c0_30 = arith.constant 0 : index
    %77 = vector.load %arg6[%c0_29, %c0_30] : memref<1x24xf32, #tpu.memory_space<vmem>>, vector<1x24xf32>
    %78 = vector.broadcast %77 : vector<1x24xf32> to vector<48x24xf32>
    %79 = arith.addf %76, %78 : vector<48x24xf32>
    %c0_31 = arith.constant 0 : index
    %c0_32 = arith.constant 0 : index
    %80 = vector.load %arg7[%c0_31, %c0_32] : memref<48x24xf32, #tpu.memory_space<vmem>>, vector<48x24xf32>
    %81 = arith.addf %79, %80 : vector<48x24xf32>
    %cst_33 = arith.constant dense<0xFF800000> : vector<48xf32>
    %82 = vector.multi_reduction <maximumf>, %81, %cst_33 [1] : vector<48x24xf32> to vector<48xf32>
    %83 = vector.shape_cast %82 : vector<48xf32> to vector<48x1xf32>
    %84 = vector.broadcast %83 : vector<48x1xf32> to vector<48x24xf32>
    %85 = arith.subf %81, %84 : vector<48x24xf32>
    %86 = math.exp %85 : vector<48x24xf32>
    %cst_34 = arith.constant dense<0.000000e+00> : vector<48xf32>
    %87 = vector.multi_reduction <add>, %86, %cst_34 [1] : vector<48x24xf32> to vector<48xf32>
    %88 = vector.shape_cast %87 : vector<48xf32> to vector<48x1xf32>
    %89 = tpu.reciprocal %88 : vector<48x1xf32> -> vector<48x1xf32>
    %90 = vector.broadcast %89 : vector<48x1xf32> to vector<48x24xf32>
    %91 = arith.mulf %86, %90 : vector<48x24xf32>
    %c0_35 = arith.constant 0 : index
    %c0_36 = arith.constant 0 : index
    %92 = vector.load %arg8[%c0_35, %c0_36] : memref<48x24xf32, #tpu.memory_space<vmem>>, vector<48x24xf32>
    tpu.vector_store %arg8[%c0_35, %c0_36], %91 {strides = array<i32>} : memref<48x24xf32, #tpu.memory_space<vmem>>, vector<48x24xf32>,
    return
  }
}

</mosaic_0001>

<bundles_post_ra>
// kernel: tatt1_forward.1
= control target key start
LH: loop header
LB: loop body
LE: loop exit
PB: predicated region body
PF: predicated region fallthrough
CT: control target
= control target key end

     0   :  { %s1631_s0 = inlined_call_operand.vmem [shape: f32[48,64], index: 0, kind: input, shape index: {}]   ;;  %s1632_s1 = inlined_call_operand.vmem [shape: f32[64,8], index: 1, kind: input, shape index: {}]   ;;  %s1633_s2 = inlined_call_operand.vmem [shape: f32[64,4], index: 2, kind: input, shape index: {}]   ;;  %s1634_s3 = inlined_call_operand.vmem [shape: f32[48,48], index: 3, kind: input, shape index: {}]   ;;  %s1635_s4 = inlined_call_operand.vmem [shape: f32[48,24], index: 4, kind: input, shape index: {}]   ;;  %s1636_s5 = inlined_call_operand.vmem [shape: f32[1,24], index: 5, kind: input, shape index: {}]   ;;  %s1637_s6 = inlined_call_operand.vmem [shape: f32[1,24], index: 6, kind: input, shape index: {}]   ;;  %s1638_s7 = inlined_call_operand.vmem [shape: f32[48,24], index: 7, kind: input, shape index: {}]   ;;  %s1639_s8 = inlined_call_operand.hbm [shape: f32[48,24], index: 8, kind: output, shape index: {}]  }
   0x1   :  { %v105_v0 = vld [vmem:[%s1633_s2 + $0x38] sm:$0xff]  ;;  %v104_v1 = vld [vmem:[%s1633_s2 + $0x30] sm:$0xff]  ;;  %v103_v2 = vld [vmem:[%s1633_s2 + $0x28] sm:$0xff] }
   0x2   :  { %114 = vmatpush.msra.mxu1 %v105_v0  ;;  %v102_v3 = vld [vmem:[%s1633_s2 + $0x20] sm:$0xff] }
   0x4   :  { %115 = vmatpush.msra.mxu1 %v104_v1 }
   0x5   :  { %13 = vsyncpa [#allocation3], 0  ;;  %v101_v4 = vld [vmem:[%s1633_s2 + $0x18] sm:$0xff]  ;;  %v100_v5 = vld [vmem:[%s1633_s2 + $0x10] sm:$0xff]  ;;  %vm44_vm0 = vcmask 523264   ;;  %v185_v14 = vlaneseq  ;;  %v1123_v27 = vmov 0  }
   0x6   :  { %116 = vmatpush.msra.mxu1 %v103_v2  ;;  %v99_v6 = vld [vmem:[%s1633_s2 + $0x8] sm:$0xff]  ;;  %v98_v7 = vld [vmem:[%s1633_s2] sm:$0xff]  ;;  %v1214_v10 = vld [vmem:[%s1631_s0 + $0x10] sm:$0xff]  ;;  %vm147_vm15 = vcmask 1040384   ;;  %s998_s14 = sshll.u32 %s1639_s8, 4  ;;  %s1126_s15 = smov 128   ;;  %s999_s14 = int_to_ptr.hbm [resolvable:$true] %s998_s14 }
   0x7   :  { %v1200_v8 = vld [vmem:[%s1631_s0] sm:$0xff]  ;;  %v1207_v9 = vld [vmem:[%s1631_s0 + $0x8] sm:$0xff]  ;;  %v1221_v11 = vld [vmem:[%s1631_s0 + $0x18] sm:$0xff]  ;;  %v1239_v15 = vshrl.u32 %v185_v14, 7  ;;  %s1127_s8 = smov 8  }
   0x8   :  { %117 = vmatpush.msra.mxu1 %v102_v3  ;;  %v1228_v12 = vld [vmem:[%s1631_s0 + $0x20] sm:$0xff]  ;;  %v1235_v13 = vld [vmem:[%s1631_s0 + $0x28] sm:$0xff] }
   0x9   :  { %v195_v16 = vand.u32 65535, %v1239_v15  ;;  %v196_v17 = vshrl.u32 %v1239_v15, 16  ;;  %v1244_v24 = vadd.s32 8, %v1239_v15  ;;  %v1251_v33 = vadd.s32 16, %v1239_v15 }
   0xa   :  { %118 = vmatpush.msra.mxu1 %v101_v4  ;;  %v1259_v51 = vadd.s32 24, %v1239_v15  ;;  %v1269_v1 = vadd.s32 32, %v1239_v15 }
   0xb   :  { %v199_v18 = vmul.u32 43690, %v195_v16  ;;  %v198_v19 = vmul.u32 43691, %v195_v16  ;;  %v200_v20 = vmul.u32 43691, %v196_v17  ;;  %v201_v25 = vmul.u32 43690, %v196_v17 }
   0xc   :  { %119 = vmatpush.msra.mxu1 %v100_v5  ;;  %v224_v26 = vand.u32 65535, %v1244_v24  ;;  %v225_v29 = vshrl.u32 %v1244_v24, 16  ;;  %v253_v37 = vand.u32 65535, %v1251_v33  ;;  %v254_v40 = vshrl.u32 %v1251_v33, 16 }
   0xd   :  { %v202_v21 = vshll.u32 %v199_v18, 16  ;;  %v204_v22 = vshll.u32 %v200_v20, 16  ;;  %v203_v38 = vshrl.u32 %v199_v18, 16  ;;  %v205_v44 = vshrl.u32 %v200_v20, 16 }
   0xe   :  { %120 = vmatpush.msra.mxu1 %v99_v6  ;;  %v228_v30 = vmul.u32 43690, %v224_v26  ;;  %v227_v34 = vmul.u32 43691, %v224_v26  ;;  %v229_v35 = vmul.u32 43691, %v225_v29  ;;  %v257_v41 = vmul.u32 43690, %v253_v37 }
   0xf   :  { %vm206_vm1 = vc.u32 %v198_v19, %v202_v21  ;;  %v208_v23 = vadd.s32 %v202_v21, %v198_v19  ;;  %v1255_v46 = vmul.u32 43691, %v254_v40  ;;  %v230_v47 = vmul.u32 43690, %v225_v29 }
  0x10   :  { %121 = vmatpush.msra.mxu1 %v98_v7  ;;  %v207_v28 = vsel %vm206_vm1, 1, %v1123_v27  ;;  %v231_v36 = vshll.u32 %v228_v30, 16  ;;  %v233_v42 = vshll.u32 %v229_v35, 16  ;;  %v256_v48 = vmul.u32 43691, %v253_v37 }
  0x11   :  { %1016 = vmatmul.msk.f32.vlgmr.msra.gmra.mxu1 %vm44_vm0, %v1200_v8  ;;  %vm210_vm2 = vc.u32 %v208_v23, %v204_v22  ;;  %v209_v31 = vadd.s32 %v207_v28, %v201_v25  ;;  %v260_v49 = vshll.u32 %v257_v41, 16  ;;  %v262_v53 = vshll.u32 %v1255_v46, 16 }
  0x12   :  { %v211_v32 = vsel %vm210_vm2, 1, %v1123_v27  ;;  %v237_v43 = vadd.s32 %v231_v36, %v227_v34  ;;  %vm235_vm3 = vc.u32 %v227_v34, %v231_v36  ;;  %v282_v57 = vand.u32 65535, %v1259_v51 }
  0x13   :  { %v213_v39 = vadd.s32 %v211_v32, %v209_v31  ;;  %v236_v50 = vsel %vm235_vm3, 1, %v1123_v27  ;;  %vm264_vm5 = vc.u32 %v256_v48, %v260_v49  ;;  %v266_v56 = vadd.s32 %v260_v49, %v256_v48  ;;  %v42_v31 = vld [vmem:[%s1632_s1 + $0x30] sm:$0xff] }
  0x14   :  { %vm239_vm4 = vc.u32 %v237_v43, %v233_v42  ;;  %v238_v54 = vadd.s32 %v236_v50, %v230_v47  ;;  %v283_v58 = vshrl.u32 %v1259_v51, 16  ;;  %v259_v60 = vmul.u32 43690, %v254_v40  ;;  %v40_v50 = vld [vmem:[%s1632_s1 + $0x20] sm:$0xff] }
  0x15   :  { %v214_v45 = vadd.s32 %v213_v39, %v203_v38  ;;  %v240_v55 = vsel %vm239_vm4, 1, %v1123_v27  ;;  %v1265_v61 = vmul.u32 43690, %v282_v57  ;;  %v265_v62 = vsel %vm264_vm5, 1, %v1123_v27  ;;  %v41_v38 = vld [vmem:[%s1632_s1 + $0x28] sm:$0xff] }
  0x16   :  { %v232_v63 = vshrl.u32 %v228_v30, 16  ;;  %v242_v0 = vadd.s32 %v240_v55, %v238_v54  ;;  %vm268_vm6 = vc.u32 %v266_v56, %v262_v53  ;;  %v285_v2 = vmul.u32 43691, %v282_v57  ;;  %v43_v30 = vld [vmem:[%s1632_s1 + $0x38] sm:$0xff] }
  0x17   :  { %v215_v52 = vadd.s32 %v214_v45, %v205_v44  ;;  %v1271_v3 = vmul.u32 43691, %v283_v58  ;;  %v289_v4 = vshll.u32 %v1265_v61, 16  ;;  %v267_v5 = vadd.s32 %v265_v62, %v259_v60  ;;  %71 = vmatpush.msra.mxu0 %v43_v30  ;;  %v39_v56 = vld [vmem:[%s1632_s1 + $0x18] sm:$0xff]  ;;  %v38_v62 = vld [vmem:[%s1632_s1 + $0x10] sm:$0xff] }
  0x18   :  { %v311_v6 = vand.u32 65535, %v1269_v1  ;;  %v269_v14 = vsel %vm268_vm6, 1, %v1123_v27  ;;  %v234_v16 = vshrl.u32 %v229_v35, 16  ;;  %v243_v17 = vadd.s32 %v242_v0, %v232_v63 }
  0x19   :  { %1017 = vmatmul.msk.f32.gmra.mxu1 %vm44_vm0, %v1207_v9  ;;  %v216_v59 = vshrl.u32 %v215_v52, 4  ;;  %v291_v18 = vshll.u32 %v1271_v3, 16  ;;  %v295_v19 = vadd.s32 %v289_v4, %v285_v2  ;;  %v312_v20 = vshrl.u32 %v1269_v1, 16  ;;  %72 = vmatpush.msra.mxu0 %v42_v31 }
  0x1a   :  { %v1278_v21 = vmul.u32 43690, %v311_v6  ;;  %vm293_vm7 = vc.u32 %v285_v2, %v289_v4  ;;  %v261_v22 = vshrl.u32 %v257_v41, 16  ;;  %v271_v23 = vadd.s32 %v269_v14, %v267_v5 }
  0x1b   :  { %v217_v7 = vmul.u32 24, %v216_v59  ;;  %v244_v26 = vadd.s32 %v243_v17, %v234_v16  ;;  %v1282_v28 = vadd.s32 40, %v1239_v15  ;;  %v288_v29 = vmul.u32 43690, %v283_v58  ;;  %73 = vmatpush.msra.mxu0 %v41_v38 }
  0x1c   :  { %v294_v32 = vsel %vm293_vm7, 1, %v1123_v27  ;;  %vm1291_vm8 = vc.u32 %v295_v19, %v291_v18  ;;  %v1296_v36 = vmul.u32 43691, %v312_v20  ;;  %v318_v37 = vshll.u32 %v1278_v21, 16 }
  0x1d   :  { %v218_v25 = vsub.s32 %v1239_v15, %v217_v7  ;;  %v340_v35 = vand.u32 65535, %v1282_v28  ;;  %v314_v15 = vmul.u32 43691, %v311_v6  ;;  %v263_v39 = vshrl.u32 %v1255_v46, 16  ;;  %74 = vmatpush.msra.mxu0 %v40_v50  ;;  %v37_v6 = vld [vmem:[%s1632_s1 + $0x8] sm:$0xff] }
  0x1e   :  { %v272_v40 = vadd.s32 %v271_v23, %v261_v22  ;;  %v245_v41 = vshrl.u32 %v244_v26, 4  ;;  %v296_v42 = vadd.s32 %v294_v32, %v288_v29  ;;  %v341_v43 = vshrl.u32 %v1282_v28, 16 }
  0x1f   :  { %vm366_vm9 = vcmp.ne.s32.totalorder %v218_v25, 0  ;;  %vm372_vm10 = vcmp.lt.s32.totalorder %v218_v25, 0  ;;  %v1304_v44 = vmul.u32 43690, %v340_v35  ;;  %v298_v45 = vsel %vm1291_vm8, 1, %v1123_v27  ;;  %75 = vmatpush.msra.mxu0 %v39_v56 }
  0x20   :  { %v320_v47 = vshll.u32 %v1296_v36, 16  ;;  %vm322_vm11 = vc.u32 %v314_v15, %v318_v37  ;;  %v324_v48 = vadd.s32 %v318_v37, %v314_v15  ;;  %v384_v46 = vadd.s32 24, %v218_v25  ;;  %vm378_vm12 = vmand %vm372_vm10, %vm366_vm9 }
  0x21   :  { %1018 = vmatmul.msk.f32.gmra.mxu1 %vm44_vm0, %v1214_v10  ;;  %v273_v49 = vadd.s32 %v272_v40, %v263_v39  ;;  %v246_v52 = vmul.u32 24, %v245_v41  ;;  %v317_v53 = vmul.u32 43690, %v312_v20  ;;  %v290_v54 = vshrl.u32 %v1265_v61, 16  ;;  %76 = vmatpush.msra.mxu0 %v38_v62 }
  0x22   :  { %v300_v55 = vadd.s32 %v298_v45, %v296_v42  ;;  %v343_v57 = vmul.u32 43691, %v340_v35  ;;  %v1317_v58 = vmul.u32 43691, %v341_v43  ;;  %v347_v59 = vshll.u32 %v1304_v44, 16 }
  0x23   :  { %v323_v60 = vsel %vm322_vm11, 1, %v1123_v27  ;;  %vm326_vm13 = vc.u32 %v324_v48, %v320_v47  ;;  %v390_v63 = vsel %vm378_vm12, %v384_v46, %v218_v25  ;;  %v274_v61 = vshrl.u32 %v273_v49, 4  ;;  %77 = vmatpush.msra.mxu0 %v37_v6 }
  0x24   :  { %v247_v0 = vsub.s32 %v1244_v24, %v246_v52  ;;  %v325_v2 = vadd.s32 %v323_v60, %v317_v53  ;;  %v292_v4 = vshrl.u32 %v1271_v3, 16  ;;  %v301_v5 = vadd.s32 %v300_v55, %v290_v54  ;;  %v36_v3 = vld [vmem:[%s1632_s1] sm:$0xff]  ;;  %s1124_s1 = smov 4  }
  0x25   :  { %v349_v7 = vshll.u32 %v1317_v58, 16  ;;  %vm351_vm14 = vc.u32 %v343_v57, %v347_v59  ;;  %v353_v14 = vadd.s32 %v347_v59, %v343_v57  ;;  %v327_v16 = vsel %vm326_vm13, 1, %v1123_v27  ;;  %78 = vmatpush.msra.mxu0 %v36_v3 }
  0x26   :  { %vm396_vm1 = vcmp.eq.s32.totalorder %v390_v63, 0  ;;  %v275_v17 = vmul.u32 24, %v274_v61  ;;  %v346_v24 = vmul.u32 43690, %v341_v43  ;;  %v352_v19 = vsel %vm351_vm14, 1, %v1123_v27  ;;  %1010 = vmatmul.msk.f32.vlgmr.msra.gmra.mxu0 %vm44_vm0, %v1200_v8 }
  0x27   :  { %v319_v20 = vshrl.u32 %v1278_v21, 16  ;;  %v329_v22 = vadd.s32 %v327_v16, %v325_v2  ;;  %v302_v23 = vadd.s32 %v301_v5, %v292_v4  ;;  %vm367_vm2 = vcmp.ne.s32.totalorder %v247_v0, 0 }
  0x28   :  { %vm373_vm3 = vcmp.lt.s32.totalorder %v247_v0, 0  ;;  %vm355_vm4 = vc.u32 %v353_v14, %v349_v7  ;;  %v385_v26 = vadd.s32 24, %v247_v0  ;;  %v276_v30 = vsub.s32 %v1251_v33, %v275_v17 }
  0x29   :  { %1019 = vmatmul.msk.f32.gmra.mxu1 %vm44_vm0, %v1221_v11  ;;  %v354_v31 = vadd.s32 %v352_v19, %v346_v24  ;;  %v321_v32 = vshrl.u32 %v1296_v36, 16  ;;  %vm379_vm5 = vmand %vm373_vm3, %vm367_vm2  ;;  %v356_v21 = vsel %vm355_vm4, 1, %v1123_v27  ;;  %v330_v34 = vadd.s32 %v329_v22, %v319_v20 }
  0x2a   :  { %v303_v35 = vshrl.u32 %v302_v23, 4  ;;  %vm166_vm6 = vcmask 1046528   ;;  %v1345_v37 = vsel %vm379_vm5, %v385_v26, %v247_v0  ;;  %v348_v8 = vshrl.u32 %v1304_v44, 16 }
  0x2b   :  { %v358_v38 = vadd.s32 %v356_v21, %v354_v31  ;;  %vm368_vm7 = vcmp.ne.s32.totalorder %v276_v30, 0  ;;  %vm374_vm8 = vcmp.lt.s32.totalorder %v276_v30, 0  ;;  %v331_v33 = vadd.s32 %v330_v34, %v321_v32 }
  0x2c   :  { %v304_v36 = vmul.u32 24, %v303_v35  ;;  %vm420_vm9 = vcmp.eq.s32.totalorder %v390_v63, 23  ;;  %v386_v42 = vadd.s32 24, %v276_v30  ;;  %vm397_vm10 = vcmp.eq.s32.totalorder %v1345_v37, 0  ;;  %vm380_vm11 = vmand %vm374_vm8, %vm368_vm7 }
  0x2d   :  { %v350_v44 = vshrl.u32 %v1317_v58, 16  ;;  %v359_v45 = vadd.s32 %v358_v38, %v348_v8  ;;  %v332_v48 = vshrl.u32 %v331_v33, 4 }
  0x2e   :  { %1011 = vmatmul.msk.f32.gmra.mxu0 %vm44_vm0, %v1207_v9  ;;  %v305_v46 = vsub.s32 %v1259_v51, %v304_v36  ;;  %v392_v52 = vsel %vm380_vm11, %v386_v42, %v276_v30 }
  0x2f   :  { %v360_v53 = vadd.s32 %v359_v45, %v350_v44  ;;  %v333_v54 = vmul.u32 24, %v332_v48  ;;  %vm398_vm14 = vcmp.eq.s32.totalorder %v392_v52, 0  ;;  %vm422_vm2 = vcmp.eq.s32.totalorder %v392_v52, 23 }
  0x30   :  { %vm369_vm12 = vcmp.ne.s32.totalorder %v305_v46, 0  ;;  %vm375_vm13 = vcmp.lt.s32.totalorder %v305_v46, 0  ;;  %v387_v56 = vadd.s32 24, %v305_v46 }
  0x31   :  { %1020 = vmatmul.msk.f32.gmra.mxu1 %vm44_vm0, %v1228_v12  ;;  %v361_v51 = vshrl.u32 %v360_v53, 4  ;;  %v334_v58 = vsub.s32 %v1269_v1, %v333_v54  ;;  %v565_v53 = vld [vmem:[%s1635_s4 + $0x8] sm:$0xff] }
  0x33   :  { %v362_v62 = vmul.u32 24, %v361_v51  ;;  %vm370_vm3 = vcmp.ne.s32.totalorder %v334_v58, 0  ;;  %vm376_vm4 = vcmp.lt.s32.totalorder %v334_v58, 0  ;;  %v388_v4 = vadd.s32 24, %v334_v58 }
  0x34   :  { %vm382_vm7 = vmand %vm376_vm4, %vm370_vm3  ;;  %vm468_vm3 = vcmask 31744  }
  0x35   :  { %v363_v5 = vsub.s32 %v1282_v28, %v362_v62  ;;  %v394_v14 = vsel %vm382_vm7, %v388_v4, %v334_v58  ;;  %v568_v4 = vld [vmem:[%s1635_s4 + $0x20] sm:$0xff] }
  0x36   :  { %1012 = vmatmul.msk.f32.gmra.mxu0 %vm44_vm0, %v1214_v10  ;;  %vm400_vm11 = vcmp.eq.s32.totalorder %v394_v14, 0 }
  0x37   :  { %vm371_vm8 = vcmp.ne.s32.totalorder %v363_v5, 0  ;;  %v389_v24 = vadd.s32 24, %v363_v5 }
  0x39   :  { %1021 = vmatmul.msk.f32.gmra.mxu1 %vm44_vm0, %v1235_v13 }
  0x3e   :  { %1013 = vmatmul.msk.f32.gmra.mxu0 %vm44_vm0, %v1221_v11 }
  0x46   :  { %1014 = vmatmul.msk.f32.gmra.mxu0 %vm44_vm0, %v1228_v12 }
  0x4e   :  { %1015 = vmatmul.msk.f32.gmra.mxu0 %vm44_vm0, %v1235_v13  ;;  %vm475_vm0 = vcmask 64512  }
  0x8e   :  { %v123_v18 = vpop.f32.mrf.mxu1 }
  0x8f   :  { %v148_v25 = vrot.slane %v123_v18, 7  ;;  %v167_v40 = vrot.slane %v123_v18, 1 }
  0x91   :  { %v165_v29 = vsel %vm147_vm15, 0.0, %v148_v25 }
  0x92   :  { %v1343_v15 = vsel %vm396_vm1, 0.0, %v165_v29  ;;  %vm381_vm1 = vmand %vm375_vm13, %vm369_vm12 }
  0x93   :  { %v393_v60 = vsel %vm381_vm1, %v387_v56, %v305_v46  ;;  %vm424_vm1 = vcmp.eq.s32.totalorder %v394_v14, 23  ;;  %v567_v56 = vld [vmem:[%s1635_s4 + $0x18] sm:$0xff] }
  0x94   :  { %vm399_vm5 = vcmp.eq.s32.totalorder %v393_v60, 0 }
  0x96   :  { %v1348_v39 = vpop.f32.mrf.mxu1 }
  0x97   :  { %v149_v27 = vrot.slane %v1348_v39, 7  ;;  %v168_v41 = vrot.slane %v1348_v39, 1 }
  0x99   :  { %v169_v43 = vsel %vm166_vm6, %v167_v40, %v168_v41  ;;  %v150_v49 = vsel %vm147_vm15, %v148_v25, %v149_v27 }
  0x9a   :  { %v438_v47 = vsel %vm420_vm9, 0.0, %v169_v43  ;;  %v1360_v50 = vsel %vm397_vm10, 0.0, %v150_v49  ;;  %vm377_vm9 = vcmp.lt.s32.totalorder %v363_v5, 0  ;;  %vm421_vm10 = vcmp.eq.s32.totalorder %v1345_v37, 23 }
  0x9b   :  { %450 = vrot.lane.b32.xlu1 %v438_v47, %s1124_s1  ;;  %vm383_vm12 = vmand %vm377_vm9, %vm371_vm8 }
  0x9c   :  { %v395_v19 = vsel %vm383_vm12, %v389_v24, %v363_v5 }
  0x9d   :  { %vm401_vm13 = vcmp.eq.s32.totalorder %v395_v19, 0 }
  0x9e   :  { %v129_v9 = vpop.f32.mrf.mxu1 }
  0x9f   :  { %v151_v55 = vrot.slane %v129_v9, 7  ;;  %v170_v61 = vrot.slane %v129_v9, 1 }
  0xa1   :  { %v152_v57 = vsel %vm147_vm15, %v149_v27, %v151_v55  ;;  %v171_v11 = vsel %vm166_vm6, %v168_v41, %v170_v61 }
  0xa2   :  { %v416_v59 = vsel %vm398_vm14, 0.0, %v152_v57  ;;  %v439_v18 = vsel %vm421_vm10, 0.0, %v171_v11  ;;  %vm425_vm14 = vcmp.eq.s32.totalorder %v395_v19, 23 }
  0xa3   :  { %v80_v37 = vpop.f32.mrf.mxu0 }
  0xa6   :  { %v132_v63 = vpop.f32.mrf.mxu1 }
  0xa7   :  { %v153_v0 = vrot.slane %v132_v63, 7  ;;  %v172_v2 = vrot.slane %v132_v63, 1 }
  0xa9   :  { %v173_v10 = vsel %vm166_vm6, %v170_v61, %v172_v2  ;;  %v154_v1 = vsel %vm147_vm15, %v151_v55, %v153_v0  ;;  %v566_v55 = vld [vmem:[%s1635_s4 + $0x10] sm:$0xff] }
  0xaa   :  { %v440_v6 = vsel %vm422_vm2, 0.0, %v173_v10  ;;  %v417_v7 = vsel %vm399_vm5, 0.0, %v154_v1  ;;  %vm423_vm2 = vcmp.eq.s32.totalorder %v393_v60, 23 }
  0xab   :  { %454 = vrot.lane.b32.xlu0 %v440_v6, %s1124_s1  ;;  %v83_v40 = vpop.f32.mrf.mxu0 }
  0xae   :  { %v135_v16 = vpop.f32.mrf.mxu1 }
  0xaf   :  { %v155_v17 = vrot.slane %v135_v16, 7  ;;  %v174_v22 = vrot.slane %v135_v16, 1 }
  0xb1   :  { %v156_v28 = vsel %vm147_vm15, %v153_v0, %v155_v17  ;;  %v175_v21 = vsel %vm166_vm6, %v172_v2, %v174_v22 }
  0xb2   :  { %v418_v3 = vsel %vm400_vm11, 0.0, %v156_v28  ;;  %v441_v34 = vsel %vm423_vm2, 0.0, %v175_v21 }
  0xb3   :  { %452 = vrot.lane.b32.xlu0 %v439_v18, %s1124_s1  ;;  %v86_v44 = vpop.f32.mrf.mxu0 }
  0xb6   :  { %v138_v20 = vpop.f32.mrf.mxu1 }
  0xb7   :  { %v157_v23 = vrot.slane %v138_v20, 7  ;;  %v176_v25 = vrot.slane %v138_v20, 1 }
  0xb9   :  { %v184_v26 = vsel %vm166_vm6, %v176_v25, 0.0  ;;  %v177_v12 = vsel %vm166_vm6, %v174_v22, %v176_v25  ;;  %v158_v29 = vsel %vm147_vm15, %v155_v17, %v157_v23  ;;  %v569_v17 = vld [vmem:[%s1635_s4 + $0x28] sm:$0xff] }
  0xba   :  { %v443_v30 = vsel %vm425_vm14, 0.0, %v184_v26  ;;  %v442_v31 = vsel %vm424_vm1, 0.0, %v177_v12  ;;  %v419_v32 = vsel %vm401_vm13, 0.0, %v158_v29 }
  0xbb   :  { %460 = vrot.lane.b32.xlu1 %v443_v30, %s1124_s1  ;;  %458 = vrot.lane.b32.xlu2 %v442_v31, %s1124_s1  ;;  %v89_v45 = vpop.f32.mrf.mxu0 }
  0xc3   :  { %456 = vrot.lane.b32.xlu2 %v441_v34, %s1124_s1  ;;  %v92_v47 = vpop.f32.mrf.mxu0 }
  0xcb   :  { %v95_v48 = vpop.f32.mrf.mxu0 }
 0x10d   :  { %v451_v8 = vpop.permute.xlu1 %450 }
 0x10e   :  { %v469_v36 = vsel %vm468_vm3, %v1343_v15, %v451_v8 }
 0x115   :  { %v459_v33 = vpop.permute.xlu2 %458 }
 0x116   :  { %v473_v42 = vsel %vm468_vm3, %v418_v3, %v459_v33 }
 0x11d   :  { %v455_v13 = vpop.permute.xlu0 %454  ;;  %v457_v43 = vpop.permute.xlu2 %456 }
 0x11e   :  { %v471_v35 = vsel %vm468_vm3, %v416_v59, %v455_v13  ;;  %v472_v15 = vsel %vm468_vm3, %v417_v7, %v457_v43 }
 0x11f   :  { %1022 = vmatpush.xpose.msk.msra.mxu3 %vm475_vm0, %v471_v35 }
 0x125   :  { %v453_v38 = vpop.permute.xlu0 %452 }
 0x126   :  { %v470_v39 = vsel %vm468_vm3, %v1360_v50, %v453_v38  ;;  %v564_v50 = vld [vmem:[%s1635_s4] sm:$0xff] }
 0x127   :  { %1023 = vmatpush.xpose.msk.msra.mxu3 %vm475_vm0, %v470_v39 }
 0x12b   :  { %1024 = vmatpush.xpose.msk.msra.mxu3 %vm475_vm0, %v469_v36 }
 0x12d   :  { %v461_v27 = vpop.permute.xlu1 %460 }
 0x12e   :  { %1025 = vmatmul.msk.f32.vlgmr.msra.gmra.mxu3 %vm475_vm0, %v80_v37  ;;  %v474_v41 = vsel %vm468_vm3, %v419_v32, %v461_v27 }
 0x12f   :  { %1028 = vmatpush.xpose.msk.msrb.mxu3 %vm475_vm0, %v474_v41 }
 0x133   :  { %1029 = vmatpush.xpose.msk.msrb.mxu3 %vm475_vm0, %v473_v42 }
 0x136   :  { %1026 = vmatmul.msk.f32.gmra.mxu3 %vm475_vm0, %v83_v40 }
 0x137   :  { %1030 = vmatpush.xpose.msk.msrb.mxu3 %vm475_vm0, %v472_v15 }
 0x13e   :  { %1027 = vmatmul.msk.f32.gmra.mxu3 %vm475_vm0, %v86_v44 }
 0x146   :  { %1031 = vmatmul.msk.f32.vlgmr.msrb.gmra.mxu3 %vm475_vm0, %v89_v45 }
 0x14e   :  { %1032 = vmatmul.msk.f32.gmra.mxu3 %vm475_vm0, %v92_v47 }
 0x156   :  { %1033 = vmatmul.msk.f32.gmra.mxu3 %vm475_vm0, %v95_v48 }
 0x1b1   :  { %v511_v46 = vpop.f32.mrf.mxu3 }
 0x1b2   :  { %v570_v9 = vadd.f32 %v564_v50, %v511_v46 }
 0x1b4   :  { %v576_v51 = vsub.f32 0.0, %v570_v9 }
 0x1b6   :  { %v582_v62 = vmul.f32 1.442695, %v576_v51 }
 0x1b8   :  { %1047 = vpow2.f32 %v582_v62 }
 0x1b9   :  { %v514_v49 = vpop.f32.mrf.mxu3 }
 0x1ba   :  { %v571_v54 = vadd.f32 %v565_v53, %v514_v49 }
 0x1bc   :  { %v577_v57 = vsub.f32 0.0, %v571_v54 }
 0x1be   :  { %v584_v61 = vmul.f32 1.442695, %v577_v57  ;;  %v1048_v7 = vpop.eup %1047 }
 0x1bf   :  { %v1425_v24 = vadd.f32 1.0, %v1048_v7 }
 0x1c0   :  { %1049 = vpow2.f32 %v584_v61 }
 0x1c1   :  { %v517_v52 = vpop.f32.mrf.mxu3 }
 0x1c2   :  { %v572_v58 = vadd.f32 %v566_v55, %v517_v52 }
 0x1c4   :  { %v578_v0 = vsub.f32 0.0, %v572_v58 }
 0x1c6   :  { %v586_v10 = vmul.f32 1.442695, %v578_v0  ;;  %v1050_v16 = vpop.eup %1049 }
 0x1c7   :  { %v1427_v18 = vadd.f32 1.0, %v1050_v16 }
 0x1c9   :  { %v555_v59 = vpop.f32.mrf.mxu3  ;;  %v625_v16 = vand.u32 2147483648, %v1427_v18 }
 0x1ca   :  { %v573_v60 = vadd.f32 %v567_v56, %v555_v59 }
 0x1cc   :  { %v579_v63 = vsub.f32 0.0, %v573_v60 }
 0x1ce   :  { %v588_v2 = vmul.f32 1.442695, %v579_v63 }
 0x1d0   :  { %1051 = vpow2.f32 %v588_v2 }
 0x1d1   :  { %v558_v5 = vpop.f32.mrf.mxu3  ;;  %1053 = vpow2.f32 %v586_v10 }
 0x1d2   :  { %v574_v1 = vadd.f32 %v568_v4, %v558_v5 }
 0x1d4   :  { %v580_v6 = vsub.f32 0.0, %v574_v1 }
 0x1d6   :  { %v590_v14 = vmul.f32 1.442695, %v580_v6  ;;  %v1052_v11 = vpop.eup %1051 }
 0x1d7   :  { %v1054_v19 = vpop.eup %1053  ;;  %v1429_v20 = vadd.f32 1.0, %v1052_v11  ;;  %v623_v11 = vand.u32 2147483647, %v1427_v18 }
 0x1d8   :  { %1055 = vpow2.f32 %v590_v14  ;;  %v1433_v25 = vadd.f32 1.0, %v1054_v19 }
 0x1d9   :  { %v561_v28 = vpop.f32.mrf.mxu3  ;;  %1057 = vrcp.f32 %v1425_v24  ;;  %vm647_vm13 = vweird.f32 %v1429_v20  ;;  %v651_v58 = vand.u32 2147483647, %v1429_v20  ;;  %v653_v59 = vand.u32 2147483648, %v1429_v20 }
 0x1da   :  { %v575_v3 = vadd.f32 %v569_v17, %v561_v28  ;;  %1059 = vrcp.f32 %v1427_v18  ;;  %vm633_vm2 = vweird.f32 %v1433_v25  ;;  %v639_v4 = vand.u32 2147483648, %v1433_v25 }
 0x1db   :  { %1061 = vrcp.f32 %v1429_v20  ;;  %v637_v5 = vand.u32 2147483647, %v1433_v25  ;;  %v654_v7 = vor.u32 1.1754944e-38, %v653_v59 }
 0x1dc   :  { %v581_v22 = vsub.f32 0.0, %v575_v3  ;;  %v640_v19 = vor.u32 1.1754944e-38, %v639_v4 }
 0x1de   :  { %v1056_v23 = vpop.eup %1055  ;;  %v592_v26 = vmul.f32 1.442695, %v581_v22 }
 0x1df   :  { %v598_v12 = vadd.f32 1.0, %v1056_v23  ;;  %v1437_v29 = vpop.eup %1057  ;;  %v609_v23 = vand.u32 2147483647, %v1425_v24 }
 0x1e0   :  { %1063 = vpow2.f32 %v592_v26  ;;  %v1439_v30 = vpop.eup %1059  ;;  %v601_v8 = vmul.f32 %v1437_v29, %v1425_v24  ;;  %vm606_vm5 = vweird.f32 %v1437_v29  ;;  %v626_v26 = vor.u32 1.1754944e-38, %v625_v16 }
 0x1e1   :  { %1065 = vrcp.f32 %v598_v12  ;;  %v1441_v31 = vpop.eup %1061  ;;  %v615_v39 = vmul.f32 %v1439_v30, %v1427_v18  ;;  %vm620_vm15 = vweird.f32 %v1439_v30  ;;  %vm661_vm7 = vweird.f32 %v598_v12 }
 0x1e2   :  { %1067 = vrcp.f32 %v1433_v25  ;;  %v643_v37 = vmul.f32 %v1441_v31, %v1429_v20  ;;  %v602_v40 = vsub.f32 1.0, %v601_v8  ;;  %v667_v9 = vand.u32 2147483648, %v598_v12 }
 0x1e3   :  { %v616_v42 = vsub.f32 1.0, %v615_v39  ;;  %vm648_vm8 = vweird.f32 %v1441_v31  ;;  %v665_v56 = vand.u32 2147483647, %v598_v12  ;;  %v611_v20 = vand.u32 2147483648, %v1425_v24 }
 0x1e4   :  { %v644_v36 = vsub.f32 1.0, %v643_v37  ;;  %v603_v47 = vmul.f32 %v1437_v29, %v602_v40  ;;  %v668_v0 = vor.u32 1.1754944e-38, %v667_v9  ;;  %vm1474_vm1 = vmor %vm647_vm13, %vm648_vm8  ;;  %vm638_vm8 = vcmp.eq.f32.partialorder %v637_v5, 8.507059e+37 }
 0x1e5   :  { %v617_v49 = vmul.f32 %v1439_v30, %v616_v42  ;;  %vm666_vm0 = vcmp.eq.f32.partialorder %v665_v56, 8.507059e+37 }
 0x1e6   :  { %v1064_v32 = vpop.eup %1063  ;;  %v645_v45 = vmul.f32 %v1441_v31, %v644_v36  ;;  %v604_v28 = vadd.f32 %v1437_v29, %v603_v47 }
 0x1e7   :  { %v1066_v21 = vpop.eup %1065  ;;  %v599_v34 = vadd.f32 1.0, %v1064_v32  ;;  %v618_v1 = vadd.f32 %v1439_v30, %v617_v49 }
 0x1e8   :  { %v1443_v13 = vpop.eup %1067  ;;  %v657_v35 = vmul.f32 %v1066_v21, %v598_v12  ;;  %vm662_vm6 = vweird.f32 %v1066_v21  ;;  %v646_v51 = vadd.f32 %v1441_v31, %v645_v45 }
 0x1e9   :  { %1069 = vrcp.f32 %v599_v34  ;;  %v629_v38 = vmul.f32 %v1443_v13, %v1433_v25  ;;  %v681_v48 = vand.u32 2147483648, %v599_v34  ;;  %v679_v52 = vand.u32 2147483647, %v599_v34  ;;  %vm1461_vm11 = vmor %vm661_vm7, %vm662_vm6 }
 0x1ea   :  { %v658_v33 = vsub.f32 1.0, %v657_v35  ;;  %vm634_vm9 = vweird.f32 %v1443_v13  ;;  %vm675_vm10 = vweird.f32 %v599_v34  ;;  %v650_v10 = vsel %vm1474_vm1, %v1441_v31, %v646_v51 }
 0x1eb   :  { %v630_v41 = vsub.f32 1.0, %v629_v38  ;;  %v682_v57 = vor.u32 1.1754944e-38, %v681_v48  ;;  %vm680_vm14 = vcmp.eq.f32.partialorder %v679_v52, 8.507059e+37  ;;  %vm1487_vm3 = vmor %vm633_vm2, %vm634_vm9  ;;  %vm619_vm6 = vweird.f32 %v1427_v18 }
 0x1ec   :  { %v659_v44 = vmul.f32 %v1066_v21, %v658_v33  ;;  %vm621_vm7 = vmor %vm619_vm6, %vm620_vm15  ;;  %vm605_vm9 = vweird.f32 %v1425_v24  ;;  %v612_v31 = vor.u32 1.1754944e-38, %v611_v20  ;;  %vm610_vm15 = vcmp.eq.f32.partialorder %v609_v23, 8.507059e+37  ;;  %v685_v24 = vld [vmem:[%s1634_s3 + $0x8] sm:$0xff] }
 0x1ed   :  { %v631_v46 = vmul.f32 %v1443_v13, %v630_v41  ;;  %v622_v22 = vsel %vm621_vm7, %v1439_v30, %v618_v1  ;;  %v684_v30 = vld [vmem:[%s1634_s3] sm:$0xff] }
 0x1ee   :  { %v660_v53 = vadd.f32 %v1066_v21, %v659_v44 }
 0x1ef   :  { %v1070_v27 = vpop.eup %1069  ;;  %v632_v63 = vadd.f32 %v1443_v13, %v631_v46 }
 0x1f0   :  { %v671_v43 = vmul.f32 %v1070_v27, %v599_v34  ;;  %vm676_vm4 = vweird.f32 %v1070_v27  ;;  %v664_v62 = vsel %vm1461_vm11, %v1066_v21, %v660_v53  ;;  %vm624_vm11 = vcmp.eq.f32.partialorder %v623_v11, 8.507059e+37  ;;  %v687_v21 = vld [vmem:[%s1634_s3 + $0x18] sm:$0xff]  ;;  %v688_v34 = vld [vmem:[%s1634_s3 + $0x20] sm:$0xff] }
 0x1f1   :  { %vm677_vm12 = vmor %vm675_vm10, %vm676_vm4  ;;  %v669_v6 = vsel %vm666_vm0, %v668_v0, %v664_v62  ;;  %vm652_vm4 = vcmp.eq.f32.partialorder %v651_v58, 8.507059e+37  ;;  %v636_v17 = vsel %vm1487_vm3, %v1443_v13, %v632_v63  ;;  %v627_v12 = vsel %vm624_vm11, %v626_v26, %v622_v22  ;;  %v689_v13 = vld [vmem:[%s1634_s3 + $0x28] sm:$0xff] }
 0x1f2   :  { %v672_v15 = vsub.f32 1.0, %v671_v43  ;;  %v655_v3 = vsel %vm652_vm4, %v654_v7, %v650_v10  ;;  %v641_v25 = vsel %vm638_vm8, %v640_v19, %v636_v17  ;;  %vm607_vm10 = vmor %vm605_vm9, %vm606_vm5  ;;  %vm744_vm5 = vcmask 195584  }
 0x1f3   :  { %v608_v18 = vsel %vm607_vm10, %v1437_v29, %v604_v28  ;;  %v686_v29 = vld [vmem:[%s1634_s3 + $0x10] sm:$0xff] }
 0x1f4   :  { %v673_v50 = vmul.f32 %v1070_v27, %v672_v15  ;;  %v613_v32 = vsel %vm610_vm15, %v612_v31, %v608_v18 }
 0x1f6   :  { %v674_v54 = vadd.f32 %v1070_v27, %v673_v50 }
 0x1f8   :  { %v678_v60 = vsel %vm677_vm12, %v1070_v27, %v674_v54  ;;  %vm690_vm12 = vcmask 392192  }
 0x1f9   :  { %v683_v61 = vsel %vm680_vm14, %v682_v57, %v678_v60 }
 0x1fa   :  { %719 = vmatpush.msra.mxu2 %v683_v61 }
 0x1fc   :  { %720 = vmatpush.msra.mxu2 %v669_v6 }
 0x1fe   :  { %721 = vmatpush.msra.mxu2 %v655_v3 }
 0x200   :  { %722 = vmatpush.msra.mxu2 %v641_v25 }
 0x202   :  { %723 = vmatpush.msra.mxu2 %v627_v12 }
 0x204   :  { %724 = vmatpush.msra.mxu2 %v613_v32 }
 0x205   :  { %1034 = vmatmul.msk.f32.vlgmr.msra.gmra.mxu2 %vm690_vm12, %v684_v30 }
 0x20d   :  { %1035 = vmatmul.msk.f32.gmra.mxu2 %vm690_vm12, %v685_v24 }
 0x215   :  { %1036 = vmatmul.msk.f32.gmra.mxu2 %vm690_vm12, %v686_v29 }
 0x21d   :  { %1037 = vmatmul.msk.f32.gmra.mxu2 %vm690_vm12, %v687_v21  ;;  %v1045_v21 = vld [vmem:[%s1636_s5] ss:$0 sm:$0xff] }
 0x225   :  { %1038 = vmatmul.msk.f32.gmra.mxu2 %vm690_vm12, %v688_v34 }
 0x22d   :  { %1039 = vmatmul.msk.f32.gmra.mxu2 %vm690_vm12, %v689_v13 }
 0x288   :  { %v726_v35 = vpop.f32.mrf.mxu2 }
 0x289   :  { %v745_v36 = vsel %vm744_vm5, %v726_v35, 0.0 }
 0x290   :  { %v729_v37 = vpop.f32.mrf.mxu2 }
 0x291   :  { %v746_v39 = vsel %vm744_vm5, %v729_v37, 0.0 }
 0x292   :  { %v747_v27 = vadd.f32 %v746_v39, %v745_v36 }
 0x298   :  { %v732_v8 = vpop.f32.mrf.mxu2 }
 0x299   :  { %v748_v40 = vsel %vm744_vm5, %v732_v8, 0.0 }
 0x29a   :  { %v749_v42 = vadd.f32 %v748_v40, %v747_v27 }
 0x2a0   :  { %v735_v38 = vpop.f32.mrf.mxu2 }
 0x2a1   :  { %v750_v41 = vsel %vm744_vm5, %v735_v38, 0.0 }
 0x2a2   :  { %v751_v44 = vadd.f32 %v750_v41, %v749_v42  ;;  %v832_v42 = vld [vmem:[%s1638_s7 + $0x10] sm:$0xff] }
 0x2a8   :  { %v738_v33 = vpop.f32.mrf.mxu2 }
 0x2a9   :  { %v752_v43 = vsel %vm744_vm5, %v738_v33, 0.0 }
 0x2aa   :  { %v753_v15 = vadd.f32 %v752_v43, %v751_v44  ;;  %v831_v43 = vld [vmem:[%s1638_s7 + $0x8] sm:$0xff]  ;;  %v830_v44 = vld [vmem:[%s1638_s7] sm:$0xff] }
 0x2b0   :  { %v741_v45 = vpop.f32.mrf.mxu2 }
 0x2b1   :  { %v754_v47 = vsel %vm744_vm5, %v741_v45, 0.0 }
 0x2b2   :  { %v755_v48 = vadd.f32 %v754_v47, %v753_v15 }
 0x2b4   :  { %v756_v46 = vrot.slane %v755_v48, 4 }
 0x2b6   :  { %v757_v49 = vadd.f32 %v756_v46, %v755_v48 }
 0x2b8   :  { %v758_v50 = vrot.slane %v757_v49, 2 }
 0x2ba   :  { %v759_v52 = vadd.f32 %v758_v50, %v757_v49 }
 0x2bc   :  { %v760_v53 = vrot.slane %v759_v52, 1 }
 0x2be   :  { %v761_v9 = vadd.f32 %v760_v53, %v759_v52 }
 0x2c0   :  { %v762_v54 = vmul.f32 0.020833334, %v761_v9 }
 0x2c2   :  { %v763_v55 = vsub.f32 %v726_v35, %v762_v54  ;;  %v764_v56 = vsub.f32 %v729_v37, %v762_v54  ;;  %v765_v51 = vsub.f32 %v732_v8, %v762_v54  ;;  %v766_v57 = vsub.f32 %v735_v38, %v762_v54  ;;  %v1046_v37 = vld [vmem:[%s1637_s6] ss:$0 sm:$0xff] }
 0x2c3   :  { %v767_v58 = vsub.f32 %v738_v33, %v762_v54  ;;  %v768_v63 = vsub.f32 %v741_v45, %v762_v54 }
 0x2c4   :  { %v769_v59 = vmul.f32 %v763_v55, %v763_v55  ;;  %v770_v60 = vmul.f32 %v764_v56, %v764_v56  ;;  %v771_v62 = vmul.f32 %v765_v51, %v765_v51  ;;  %v772_v61 = vmul.f32 %v766_v57, %v766_v57 }
 0x2c5   :  { %v773_v10 = vmul.f32 %v767_v58, %v767_v58  ;;  %v774_v6 = vmul.f32 %v768_v63, %v768_v63 }
 0x2c6   :  { %v775_v0 = vsel %vm744_vm5, %v769_v59, 0.0  ;;  %v776_v2 = vsel %vm744_vm5, %v770_v60, 0.0  ;;  %v778_v5 = vsel %vm744_vm5, %v771_v62, 0.0  ;;  %v780_v7 = vsel %vm744_vm5, %v772_v61, 0.0  ;;  %v834_v59 = vld [vmem:[%s1638_s7 + $0x20] sm:$0xff] }
 0x2c7   :  { %v777_v4 = vadd.f32 %v776_v2, %v775_v0  ;;  %v782_v16 = vsel %vm744_vm5, %v773_v10, 0.0  ;;  %v784_v11 = vsel %vm744_vm5, %v774_v6, 0.0 }
 0x2c9   :  { %v779_v1 = vadd.f32 %v778_v5, %v777_v4 }
 0x2cb   :  { %v781_v14 = vadd.f32 %v780_v7, %v779_v1 }
 0x2cd   :  { %v783_v17 = vadd.f32 %v782_v16, %v781_v14 }
 0x2cf   :  { %v785_v28 = vadd.f32 %v784_v11, %v783_v17 }
 0x2d1   :  { %v786_v3 = vrot.slane %v785_v28, 4 }
 0x2d3   :  { %v787_v19 = vadd.f32 %v786_v3, %v785_v28 }
 0x2d5   :  { %v788_v20 = vrot.slane %v787_v19, 2 }
 0x2d7   :  { %v789_v22 = vadd.f32 %v788_v20, %v787_v19 }
 0x2d9   :  { %v790_v23 = vrot.slane %v789_v22, 1 }
 0x2db   :  { %v791_v25 = vadd.f32 %v790_v23, %v789_v22 }
 0x2dd   :  { %v792_v26 = vmul.f32 0.020833334, %v791_v25 }
 0x2df   :  { %v793_v18 = vadd.f32 1e-05, %v792_v26 }
 0x2e1   :  { %1071 = vrsqrt.f32 %v793_v18  ;;  %vm800_vm14 = vweird.f32 %v793_v18 }
 0x2e7   :  { %v1072_v12 = vpop.eup %1071 }
 0x2e8   :  { %v795_v31 = vmul.f32 %v1072_v12, %v793_v18  ;;  %vm801_vm13 = vweird.f32 %v1072_v12 }
 0x2e9   :  { %vm802_vm1 = vmor %vm800_vm14, %vm801_vm13 }
 0x2ea   :  { %v796_v30 = vmul.f32 %v1072_v12, %v795_v31 }
 0x2ec   :  { %v797_v32 = vmul.f32 0.5, %v796_v30 }
 0x2ee   :  { %v798_v24 = vsub.f32 1.5, %v797_v32 }
 0x2f0   :  { %v799_v29 = vmul.f32 %v1072_v12, %v798_v24 }
 0x2f2   :  { %v803_v34 = vsel %vm802_vm1, %v1072_v12, %v799_v29 }
 0x2f3   :  { %v809_v13 = vmul.f32 %v803_v34, %v768_v63  ;;  %v806_v35 = vmul.f32 %v803_v34, %v765_v51  ;;  %v805_v8 = vmul.f32 %v803_v34, %v764_v56  ;;  %v804_v38 = vmul.f32 %v803_v34, %v763_v55  ;;  %v833_v51 = vld [vmem:[%s1638_s7 + $0x18] sm:$0xff] }
 0x2f4   :  { %v807_v39 = vmul.f32 %v803_v34, %v766_v57  ;;  %v808_v33 = vmul.f32 %v803_v34, %v767_v58  ;;  %v835_v57 = vld [vmem:[%s1638_s7 + $0x28] sm:$0xff]  ;;  %s1125_s7 = smov [#allocation2]  }
 0x2f5   :  { %v816_v36 = vmul.f32 %v1045_v21, %v806_v35  ;;  %v815_v40 = vmul.f32 %v1045_v21, %v805_v8  ;;  %v814_v27 = vmul.f32 %v1045_v21, %v804_v38  ;;  %v819_v41 = vmul.f32 %v1045_v21, %v809_v13  ;;  %s996_s12 = sshll.u32 %s1125_s7, 4  ;;  %s997_s12 = int_to_ptr.vmem [resolvable:$true] %s996_s12 }
 0x2f6   :  { %v817_v48 = vmul.f32 %v1045_v21, %v807_v39  ;;  %v818_v46 = vmul.f32 %v1045_v21, %v808_v33 }
 0x2f7   :  { %v826_v15 = vadd.f32 %v1046_v37, %v816_v36  ;;  %v825_v45 = vadd.f32 %v1046_v37, %v815_v40  ;;  %v824_v47 = vadd.f32 %v1046_v37, %v814_v27  ;;  %v829_v53 = vadd.f32 %v1046_v37, %v819_v41 }
 0x2f8   :  { %v827_v56 = vadd.f32 %v1046_v37, %v817_v48  ;;  %v828_v58 = vadd.f32 %v1046_v37, %v818_v46 }
 0x2f9   :  { %v838_v49 = vadd.f32 %v832_v42, %v826_v15  ;;  %v837_v50 = vadd.f32 %v831_v43, %v825_v45  ;;  %v836_v52 = vadd.f32 %v830_v44, %v824_v47  ;;  %v841_v62 = vadd.f32 %v835_v57, %v829_v53 }
 0x2fa   :  { %v839_v60 = vadd.f32 %v833_v51, %v827_v56  ;;  %v840_v63 = vadd.f32 %v834_v59, %v828_v58 }
 0x2fb   :  { %v848_v9 = vsel %vm744_vm5, %v838_v49, -inf  ;;  %v845_v54 = vsel %vm744_vm5, %v837_v50, -inf  ;;  %v842_v55 = vsel %vm744_vm5, %v836_v52, -inf  ;;  %v857_v0 = vsel %vm744_vm5, %v841_v62, -inf }
 0x2fc   :  { %849 = vmax.xlane.f32.xlu2 %v848_v9  ;;  %846 = vmax.xlane.f32.xlu1 %v845_v54  ;;  %v851_v61 = vsel %vm744_vm5, %v839_v60, -inf  ;;  %v854_v2 = vsel %vm744_vm5, %v840_v63, -inf }
 0x2fd   :  { %843 = vmax.xlane.f32.xlu0 %v842_v55 }
 0x304   :  { %852 = vmax.xlane.f32.xlu2 %v851_v61  ;;  %858 = vmax.xlane.f32.xlu1 %v857_v0 }
 0x305   :  { %855 = vmax.xlane.f32.xlu0 %v854_v2 }
 0x36f   :  { %v850_v4 = vpop.xlane.xlu2 %849  ;;  %v847_v10 = vpop.xlane.xlu1 %846 }
 0x370   :  { %v862_v5 = vsub.f32 %v838_v49, %v850_v4  ;;  %v861_v1 = vsub.f32 %v837_v50, %v847_v10  ;;  %v844_v6 = vpop.xlane.xlu0 %843 }
 0x371   :  { %v860_v7 = vsub.f32 %v836_v52, %v844_v6 }
 0x372   :  { %v870_v14 = vmul.f32 1.442695, %v862_v5  ;;  %v868_v16 = vmul.f32 1.442695, %v861_v1 }
 0x373   :  { %v866_v17 = vmul.f32 1.442695, %v860_v7 }
 0x374   :  { %1073 = vpow2.f32 %v870_v14 }
 0x375   :  { %1075 = vpow2.f32 %v868_v16 }
 0x376   :  { %1077 = vpow2.f32 %v866_v17 }
 0x377   :  { %v853_v11 = vpop.xlane.xlu2 %852  ;;  %v859_v28 = vpop.xlane.xlu1 %858 }
 0x378   :  { %v863_v3 = vsub.f32 %v839_v60, %v853_v11  ;;  %v865_v19 = vsub.f32 %v841_v62, %v859_v28  ;;  %v856_v20 = vpop.xlane.xlu0 %855 }
 0x379   :  { %v864_v22 = vsub.f32 %v840_v63, %v856_v20 }
 0x37a   :  { %v1567_v23 = vpop.eup %1073  ;;  %v872_v25 = vmul.f32 1.442695, %v863_v3  ;;  %v876_v26 = vmul.f32 1.442695, %v865_v19 }
 0x37b   :  { %v1569_v18 = vpop.eup %1075  ;;  %v874_v12 = vmul.f32 1.442695, %v864_v22  ;;  %v884_v31 = vsel %vm744_vm5, %v1567_v23, 0.0 }
 0x37c   :  { %v1573_v30 = vpop.eup %1077  ;;  %1079 = vpow2.f32 %v872_v25  ;;  %885 = vadd.xlane.f32.xlu1 %v884_v31  ;;  %v881_v32 = vsel %vm744_vm5, %v1569_v18, 0.0 }
 0x37d   :  { %1081 = vpow2.f32 %v876_v26  ;;  %882 = vadd.xlane.f32.xlu0 %v881_v32  ;;  %v878_v24 = vsel %vm744_vm5, %v1573_v30, 0.0 }
 0x37e   :  { %1083 = vpow2.f32 %v874_v12  ;;  %879 = vadd.xlane.f32.xlu2 %v878_v24 }
 0x382   :  { %v1579_v29 = vpop.eup %1079 }
 0x383   :  { %v1581_v21 = vpop.eup %1081  ;;  %v887_v34 = vsel %vm744_vm5, %v1579_v29, 0.0 }
 0x384   :  { %v1585_v13 = vpop.eup %1083  ;;  %v893_v35 = vsel %vm744_vm5, %v1581_v21, 0.0 }
 0x385   :  { %894 = vadd.xlane.f32.xlu1 %v893_v35  ;;  %v890_v37 = vsel %vm744_vm5, %v1585_v13, 0.0 }
 0x386   :  { %888 = vadd.xlane.f32.xlu2 %v887_v34  ;;  %891 = vadd.xlane.f32.xlu0 %v890_v37 }
 0x3ef   :  { %v886_v8 = vpop.xlane.xlu1 %885 }
 0x3f0   :  { %1085 = vrcp.f32 %v886_v8  ;;  %v883_v38 = vpop.xlane.xlu0 %882  ;;  %vm929_vm2 = vweird.f32 %v886_v8  ;;  %v933_v41 = vand.u32 2147483647, %v886_v8  ;;  %v935_v15 = vand.u32 2147483648, %v886_v8 }
 0x3f1   :  { %v880_v39 = vpop.xlane.xlu2 %879  ;;  %1087 = vrcp.f32 %v883_v38  ;;  %vm915_vm0 = vweird.f32 %v883_v38  ;;  %v919_v46 = vand.u32 2147483647, %v883_v38  ;;  %v921_v49 = vand.u32 2147483648, %v883_v38 }
 0x3f2   :  { %1089 = vrcp.f32 %v880_v39  ;;  %v905_v9 = vand.u32 2147483647, %v880_v39  ;;  %v907_v54 = vand.u32 2147483648, %v880_v39  ;;  %vm934_vm8 = vcmp.eq.f32.partialorder %v933_v41, 8.507059e+37 }
 0x3f3   :  { %v936_v57 = vor.u32 1.1754944e-38, %v935_v15  ;;  %vm901_vm9 = vweird.f32 %v880_v39  ;;  %vm920_vm11 = vcmp.eq.f32.partialorder %v919_v46, 8.507059e+37  ;;  %v922_v63 = vor.u32 1.1754944e-38, %v921_v49 }
 0x3f4   :  { %v908_v0 = vor.u32 1.1754944e-38, %v907_v54  ;;  %vm906_vm12 = vcmp.eq.f32.partialorder %v905_v9, 8.507059e+37 }
 0x3f6   :  { %v1086_v33 = vpop.eup %1085 }
 0x3f7   :  { %v1088_v36 = vpop.eup %1087  ;;  %v925_v40 = vmul.f32 %v1086_v33, %v886_v8  ;;  %vm930_vm3 = vweird.f32 %v1086_v33 }
 0x3f8   :  { %v1090_v27 = vpop.eup %1089  ;;  %v911_v42 = vmul.f32 %v1088_v36, %v883_v38  ;;  %v1591_v43 = vpop.xlane.xlu1 %894  ;;  %vm916_vm6 = vweird.f32 %v1088_v36  ;;  %vm931_vm7 = vmor %vm929_vm2, %vm930_vm3 }
 0x3f9   :  { %v926_v44 = vsub.f32 1.0, %v925_v40  ;;  %v897_v45 = vmul.f32 %v1090_v27, %v880_v39  ;;  %1091 = vrcp.f32 %v1591_v43  ;;  %v1594_v47 = vpop.xlane.xlu2 %888  ;;  %v1596_v50 = vpop.xlane.xlu0 %891  ;;  %vm902_vm4 = vweird.f32 %v1090_v27  ;;  %vm917_vm10 = vmor %vm915_vm0, %vm916_vm6 }
 0x3fa   :  { %v912_v48 = vsub.f32 1.0, %v911_v42  ;;  %1093 = vrcp.f32 %v1594_v47  ;;  %vm903_vm15 = vmor %vm901_vm9, %vm902_vm4  ;;  %v975_v3 = vand.u32 2147483647, %v1591_v43  ;;  %v977_v19 = vand.u32 2147483648, %v1591_v43 }
 0x3fb   :  { %v927_v52 = vmul.f32 %v1086_v33, %v926_v44  ;;  %v898_v53 = vsub.f32 1.0, %v897_v45  ;;  %1095 = vrcp.f32 %v1596_v50  ;;  %vm971_vm14 = vweird.f32 %v1591_v43 }
 0x3fc   :  { %v913_v55 = vmul.f32 %v1088_v36, %v912_v48  ;;  %vm943_vm1 = vweird.f32 %v1594_v47  ;;  %v947_v25 = vand.u32 2147483647, %v1594_v47  ;;  %v949_v26 = vand.u32 2147483648, %v1594_v47 }
 0x3fd   :  { %v928_v56 = vadd.f32 %v1086_v33, %v927_v52  ;;  %v899_v51 = vmul.f32 %v1090_v27, %v898_v53  ;;  %vm976_vm3 = vcmp.eq.f32.partialorder %v975_v3, 8.507059e+37  ;;  %v961_v32 = vand.u32 2147483647, %v1596_v50 }
 0x3fe   :  { %v914_v58 = vadd.f32 %v1088_v36, %v913_v55  ;;  %v963_v24 = vand.u32 2147483648, %v1596_v50  ;;  %v950_v38 = vor.u32 1.1754944e-38, %v949_v26 }
 0x3ff   :  { %v1092_v59 = vpop.eup %1091  ;;  %v932_v60 = vsel %vm931_vm7, %v1086_v33, %v928_v56  ;;  %v900_v62 = vadd.f32 %v1090_v27, %v899_v51  ;;  %vm948_vm7 = vcmp.eq.f32.partialorder %v947_v25, 8.507059e+37 }
 0x400   :  { %v937_v61 = vsel %vm934_vm8, %v936_v57, %v932_v60  ;;  %v918_v2 = vsel %vm917_vm10, %v1088_v36, %v914_v58  ;;  %v967_v4 = vmul.f32 %v1092_v59, %v1591_v43  ;;  %v1094_v10 = vpop.eup %1093  ;;  %vm972_vm13 = vweird.f32 %v1092_v59 }
 0x401   :  { %v982_v5 = vmul.f32 %v1567_v23, %v937_v61  ;;  %v904_v1 = vsel %vm903_vm15, %v1090_v27, %v900_v62  ;;  %v923_v6 = vsel %vm920_vm11, %v922_v63, %v918_v2  ;;  %v939_v17 = vmul.f32 %v1094_v10, %v1594_v47  ;;  %v1096_v11 = vpop.eup %1095  ;;  %vm973_vm0 = vmor %vm971_vm14, %vm972_vm13 }
 0x402   :  { %v909_v7 = vsel %vm906_vm12, %v908_v0, %v904_v1  ;;  %v981_v14 = vmul.f32 %v1569_v18, %v923_v6  ;;  %v968_v16 = vsub.f32 1.0, %v967_v4  ;;  %v953_v23 = vmul.f32 %v1096_v11, %v1596_v50 }
 0x403   :  { %988 = vst.msk [vmem:[#allocation2 + $0x10] sm:$0xff] %vm744_vm5, %v982_v5  ;;  %v980_v28 = vmul.f32 %v1573_v30, %v909_v7  ;;  %v940_v22 = vsub.f32 1.0, %v939_v17  ;;  %vm944_vm2 = vweird.f32 %v1094_v10  ;;  %v978_v30 = vor.u32 1.1754944e-38, %v977_v19 }
 0x404   :  { %987 = vst.msk [vmem:[#allocation2 + $0x8] sm:$0xff] %vm744_vm5, %v981_v14  ;;  %v969_v20 = vmul.f32 %v1092_v59, %v968_v16  ;;  %v954_v31 = vsub.f32 1.0, %v953_v23  ;;  %vm958_vm6 = vweird.f32 %v1096_v11  ;;  %vm945_vm4 = vmor %vm943_vm1, %vm944_vm2  ;;  %vm957_vm8 = vweird.f32 %v1596_v50 }
 0x405   :  { %986 = vst.msk [vmem:[#allocation2] sm:$0xff] %vm744_vm5, %v980_v28  ;;  %v941_v12 = vmul.f32 %v1094_v10, %v940_v22  ;;  %vm959_vm9 = vmor %vm957_vm8, %vm958_vm6  ;;  %v964_v27 = vor.u32 1.1754944e-38, %v963_v24  ;;  %vm962_vm10 = vcmp.eq.f32.partialorder %v961_v32, 8.507059e+37 }
 0x406   :  { %v970_v18 = vadd.f32 %v1092_v59, %v969_v20  ;;  %v955_v37 = vmul.f32 %v1096_v11, %v954_v31 }
 0x407   :  { %v942_v35 = vadd.f32 %v1094_v10, %v941_v12 }
 0x408   :  { %v974_v34 = vsel %vm973_vm0, %v1092_v59, %v970_v18  ;;  %v956_v36 = vadd.f32 %v1096_v11, %v955_v37 }
 0x409   :  { %v979_v8 = vsel %vm976_vm3, %v978_v30, %v974_v34  ;;  %v946_v33 = vsel %vm945_vm4, %v1094_v10, %v942_v35 }
 0x40a   :  { %v985_v39 = vmul.f32 %v1581_v21, %v979_v8  ;;  %v951_v40 = vsel %vm948_vm7, %v950_v38, %v946_v33  ;;  %v960_v42 = vsel %vm959_vm9, %v1096_v11, %v956_v36 }
 0x40b   :  { %v983_v41 = vmul.f32 %v1579_v29, %v951_v40  ;;  %v965_v21 = vsel %vm962_vm10, %v964_v27, %v960_v42 }
 0x40c   :  { %991 = vst.msk [vmem:[#allocation2 + $0x28] sm:$0xff] %vm744_vm5, %v985_v39  ;;  %v984_v43 = vmul.f32 %v1585_v13, %v965_v21 }
 0x40d   :  { %989 = vst.msk [vmem:[#allocation2 + $0x18] sm:$0xff] %vm744_vm5, %v983_v41 }
 0x40e   :  { %990 = vst.msk [vmem:[#allocation2 + $0x20] sm:$0xff] %vm744_vm5, %v984_v43 }
 0x40f   :  { %1004 = dma.vmem_to_hbm [thread:$0]  %s997_s12, 768, %s999_s14, [#allocation3], %s1126_s15, %s1126_s15, %s1127_s8  }
 0x410   :  { %1121 = dma.done.wait [#allocation3], 768  }
 0x411   :  { %1122 = vsyncadd [#allocation3], 4294966528 }
 0x412   :  { %1009 = vsyncpa [#allocation3], 1 }

</bundles_post_ra>
